<compile_context>
chip_gen: v5e
topology: v5e:2x2
jax: 0.10.0
libtpu: 0.0.40
codegen_flags: <defaults>
</compile_context>

<pallas_src>
import jax
import jax.numpy as jnp
from jax.experimental import pallas as pl
from jax.experimental.pallas import tpu as pltpu

LANE = 128


def _round_up(n, m):
    return ((n + m - 1) // m) * m


def mlp_kernel(x_ref, w1_ref, b1_ref, w2_ref, b2_ref,
               w3_ref, b3_ref, w4_ref, b4_ref, o_ref):
    """Fused 4-layer MLP on one (tile_b, D_in) batch tile.

    Matmul operands are bf16 (MXU); accumulation and every post-matmul
    elementwise op stay f32.
    """
    def linear(h_bf16, w_ref, b_ref):
        return jnp.dot(h_bf16, w_ref[...],
                       preferred_element_type=jnp.float32) + b_ref[...]

    # In-kernel f32 -> bf16 cast of the input tile (VPU, hides under the MXU).
    x_bf16 = x_ref[...].astype(jnp.bfloat16)
    h = jnp.maximum(linear(x_bf16, w1_ref, b1_ref), 0.0)                  # L1+ReLU
    h = jnp.maximum(linear(h.astype(jnp.bfloat16), w2_ref, b2_ref), 0.0)  # L2+ReLU
    h = jnp.maximum(linear(h.astype(jnp.bfloat16), w3_ref, b3_ref), 0.0)  # L3+ReLU
    z = linear(h.astype(jnp.bfloat16), w4_ref, b4_ref)                    # L4
    # Exact sigmoid via the EUP tanh (separate VLIW slot, no VALU Newton iters).
    o_ref[...] = (0.5 * jnp.tanh(0.5 * z) + 0.5).astype(o_ref.dtype)


def prepare_params(params):
    """One-time (outside the forward path) param prep:
      * hidden dims (H1, H2, H3) zero-padded to multiples of 128 lanes,
      * weights cast to bf16 for the MXU, biases kept f32.
    D_in (w1 rows) and D_out (w4 cols, b4) stay UNPADDED so the wrapper never
    has to pad the input or slice the output feature dims."""
    w1, w2, w3, w4 = params["w1"], params["w2"], params["w3"], params["w4"]
    b1, b2, b3, b4 = params["b1"], params["b2"], params["b3"], params["b4"]
    H1, H2, H3 = w1.shape[1], w2.shape[1], w3.shape[1]
    H1p, H2p, H3p = (_round_up(h, LANE) for h in (H1, H2, H3))
    return {
        "w1": jnp.pad(w1, ((0, 0), (0, H1p - H1))).astype(jnp.bfloat16),
        "b1": jnp.pad(b1, ((0, 0), (0, H1p - H1))).astype(jnp.float32),
        "w2": jnp.pad(w2, ((0, H1p - H1), (0, H2p - H2))).astype(jnp.bfloat16),
        "b2": jnp.pad(b2, ((0, 0), (0, H2p - H2))).astype(jnp.float32),
        "w3": jnp.pad(w3, ((0, H2p - H2), (0, H3p - H3))).astype(jnp.bfloat16),
        "b3": jnp.pad(b3, ((0, 0), (0, H3p - H3))).astype(jnp.float32),
        "w4": jnp.pad(w4, ((0, H3p - H3), (0, 0))).astype(jnp.bfloat16),
        "b4": b4.astype(jnp.float32),
    }


def _choose_tile_b(B, max_tile=1024):
    """Batch-tile policy:
      * B <= 512  -> one grid step of the full batch (no per-step overhead, no
        batch padding; single-TC v5e/v6e gain nothing from splitting, and a
        v7x two-TC split only pays once each core gets >= 256 rows).
      * B  > 512  -> split into >= 2 tiles (each >= 256 rows, capped at
        max_tile) so v7x's two TensorCores both get work and per-step overhead
        stays amortized on v5e/v6e."""
    if B <= 512:
        return B
    half = _round_up(pl.cdiv(B, 2), 8)
    return min(max_tile, half)


def net_forward(x, pp, *, tile_b=None, max_tile=1024):
    """x: [B, D_in] float32.  pp: output of prepare_params (padded/bf16 weights,
    f32 biases).  Returns [B, D_out] float32."""
    B, D_in = x.shape
    D_out = pp["w4"].shape[1]

    if tile_b is None:
        tile_b = _choose_tile_b(B, max_tile)
    n_tiles = pl.cdiv(B, tile_b)
    B_pad = n_tiles * tile_b

    # Only touch x if the batch actually needs padding to a whole tile count
    # (never the case on the single-tile path, where tile_b == B).
    x_in = x if B_pad == B else jnp.pad(x, ((0, B_pad - B), (0, 0)))

    def const_spec(shape):
        # Whole weight/bias array resident in VMEM; the block index never
        # changes so Pallas issues its DMA once — double-buffering cost is only
        # ~74 KiB of VMEM, i.e. negligible at these sizes.
        return pl.BlockSpec(shape, lambda i: (0, 0))

    in_specs = [
        # x tile: last block dim == full array dim (D_in) -> legal & unmasked.
        pl.BlockSpec((tile_b, D_in), lambda i: (i, 0)),
        const_spec(pp["w1"].shape), const_spec(pp["b1"].shape),
        const_spec(pp["w2"].shape), const_spec(pp["b2"].shape),
        const_spec(pp["w3"].shape), const_spec(pp["b3"].shape),
        const_spec(pp["w4"].shape), const_spec(pp["b4"].shape),
    ]
    # Output written directly at its real width (last dim == full array dim).
    out_spec = pl.BlockSpec((tile_b, D_out), lambda i: (i, 0))

    out = pl.pallas_call(
        mlp_kernel,
        out_shape=jax.ShapeDtypeStruct((B_pad, D_out), jnp.float32),
        grid_spec=pltpu.PrefetchScalarGridSpec(
            num_scalar_prefetch=0,
            grid=(n_tiles,),
            in_specs=in_specs,
            out_specs=out_spec,
        ),
        compiler_params=pltpu.CompilerParams(
            dimension_semantics=("parallel",),      # batch tiles across TCs (v7x)
            vmem_limit_bytes=32 * 1024 * 1024,      # safe on v7x's 64 MiB VMEM
        ),
    )(x_in, pp["w1"], pp["b1"], pp["w2"], pp["b2"],
      pp["w3"], pp["b3"], pp["w4"], pp["b4"])

    return out if B_pad == B else out[:B]


def init_params(key, D_in, H1, H2, H3, D_out):
    """Deterministic init mimicking nn.Linear's uniform(+-1/sqrt(fan_in))."""
    dims = [(D_in, H1), (H1, H2), (H2, H3), (H3, D_out)]
    params = {}
    for idx, (fan_in, fan_out) in enumerate(dims, start=1):
        key, kw, kb = jax.random.split(key, 3)
        bound = 1.0 / jnp.sqrt(jnp.float32(fan_in))
        params[f"w{idx}"] = jax.random.uniform(
            kw, (fan_in, fan_out), jnp.float32, minval=-bound, maxval=bound)
        params[f"b{idx}"] = jax.random.uniform(
            kb, (1, fan_out), jnp.float32, minval=-bound, maxval=bound)
    return params


def net_forward_ref_f32(x, params):
    """Pure-f32 JAX reference (the original PyTorch forward semantics)."""
    h = jax.nn.relu(x @ params["w1"] + params["b1"])
    h = jax.nn.relu(h @ params["w2"] + params["b2"])
    h = jax.nn.relu(h @ params["w3"] + params["b3"])
    return jax.nn.sigmoid(h @ params["w4"] + params["b4"])


def net_forward_ref_bf16(x, params):
    """Reference mirroring the kernel's bf16-matmul / f32-accumulate numerics."""
    def lin(h, w, b):
        return jnp.dot(h.astype(jnp.bfloat16), w.astype(jnp.bfloat16),
                       preferred_element_type=jnp.float32) + b
    h = jax.nn.relu(lin(x, params["w1"], params["b1"]))
    h = jax.nn.relu(lin(h, params["w2"], params["b2"]))
    h = jax.nn.relu(lin(h, params["w3"], params["b3"]))
    z = lin(h, params["w4"], params["b4"])
    return 0.5 * jnp.tanh(0.5 * z) + 0.5


if __name__ == "__main__":
    # Shapes consistent with Net(D_in, H1, H2, H3, D_out).
    B, D_in, H1, H2, H3, D_out = 64, 32, 64, 48, 32, 8

    key = jax.random.PRNGKey(0)
    key, kx = jax.random.split(key)
    x = jax.random.normal(kx, (B, D_in), jnp.float32)
    params = init_params(key, D_in, H1, H2, H3, D_out)

    # One-time param prep (padding + bf16 cast) outside the forward path.
    pp = jax.tree_util.tree_map(jax.block_until_ready, prepare_params(params))

    out = jax.block_until_ready(net_forward(x, pp))
    assert out.shape == (B, D_out)

    # Tight check vs a reference with identical bf16-matmul numerics.
    ref_bf16 = net_forward_ref_bf16(x, params)
    assert jnp.allclose(out, ref_bf16, atol=1e-4, rtol=1e-4), "mismatch vs bf16 ref"

    # Loose check vs the pure-f32 forward (bf16 MXU inputs drift slightly).
    ref_f32 = net_forward_ref_f32(x, params)
    assert jnp.allclose(out, ref_f32, atol=3e-2, rtol=0.0), "mismatch vs f32 ref"

    print("KERNEL_OK")
</pallas_src>

<mosaic_0001>
module attributes {stable_mosaic.version = 11 : i64} {
  func.func @mlp_kernel(%arg0: i32, %arg1: memref<64x32xf32, #tpu.memory_space<vmem>>, %arg2: memref<32x128xbf16, #tpu.memory_space<vmem>>, %arg3: memref<1x128xf32, #tpu.memory_space<vmem>>, %arg4: memref<128x128xbf16, #tpu.memory_space<vmem>>, %arg5: memref<1x128xf32, #tpu.memory_space<vmem>>, %arg6: memref<128x128xbf16, #tpu.memory_space<vmem>>, %arg7: memref<1x128xf32, #tpu.memory_space<vmem>>, %arg8: memref<128x8xbf16, #tpu.memory_space<vmem>>, %arg9: memref<1x8xf32, #tpu.memory_space<vmem>>, %arg10: memref<64x8xf32, #tpu.memory_space<vmem>>) attributes {dimension_semantics = [#tpu.dimension_semantics<parallel>], iteration_bounds = array<i64: 1>, scalar_prefetch = 0 : i64, scratch_operands = 0 : i64, tpu.core_type = #tpu.core_type<tc>, window_params = [{transform_indices = @transform_0, window_bounds = array<i64: 64, 32>}, {pipeline_mode = #tpu.pipeline_mode<synchronous>, transform_indices = @transform_1, window_bounds = array<i64: 32, 128>}, {pipeline_mode = #tpu.pipeline_mode<synchronous>, transform_indices = @transform_2, window_bounds = array<i64: 1, 128>}, {pipeline_mode = #tpu.pipeline_mode<synchronous>, transform_indices = @transform_3, window_bounds = array<i64: 128, 128>}, {pipeline_mode = #tpu.pipeline_mode<synchronous>, transform_indices = @transform_4, window_bounds = array<i64: 1, 128>}, {pipeline_mode = #tpu.pipeline_mode<synchronous>, transform_indices = @transform_5, window_bounds = array<i64: 128, 128>}, {pipeline_mode = #tpu.pipeline_mode<synchronous>, transform_indices = @transform_6, window_bounds = array<i64: 1, 128>}, {pipeline_mode = #tpu.pipeline_mode<synchronous>, transform_indices = @transform_7, window_bounds = array<i64: 128, 8>}, {pipeline_mode = #tpu.pipeline_mode<synchronous>, transform_indices = @transform_8, window_bounds = array<i64: 1, 8>}, {transform_indices = @transform_9, window_bounds = array<i64: 64, 8>}]} {
    %c0 = arith.constant 0 : index
    %c0_0 = arith.constant 0 : index
    %0 = vector.load %arg1[%c0, %c0_0] : memref<64x32xf32, #tpu.memory_space<vmem>>, vector<64x32xf32>
    %1 = arith.truncf %0 : vector<64x32xf32> to vector<64x32xbf16>
    %c0_1 = arith.constant 0 : index
    %c0_2 = arith.constant 0 : index
    %2 = vector.load %arg2[%c0_1, %c0_2] : memref<32x128xbf16, #tpu.memory_space<vmem>>, vector<32x128xbf16>
    %cst = arith.constant dense<0.000000e+00> : vector<64x128xf32>
    %3 = tpu.matmul %1, %2, %cst {dimension_numbers = #tpu.dot_dimension_numbers<[1], [0], [0], [1], [0, 0, 1, 1], [], []>} : vector<64x32xbf16>, vector<32x128xbf16>, vector<64x128xf32> -> vector<64x128xf32>
    %c0_3 = arith.constant 0 : index
    %c0_4 = arith.constant 0 : index
    %4 = vector.load %arg3[%c0_3, %c0_4] : memref<1x128xf32, #tpu.memory_space<vmem>>, vector<1x128xf32>
    %5 = vector.broadcast %4 : vector<1x128xf32> to vector<64x128xf32>
    %6 = arith.addf %3, %5 : vector<64x128xf32>
    %cst_5 = arith.constant 0.000000e+00 : f32
    %7 = vector.broadcast %cst_5 : f32 to vector<64x128xf32>
    %8 = arith.maximumf %6, %7 : vector<64x128xf32>
    %9 = arith.truncf %8 : vector<64x128xf32> to vector<64x128xbf16>
    %c0_6 = arith.constant 0 : index
    %c0_7 = arith.constant 0 : index
    %10 = vector.load %arg4[%c0_6, %c0_7] : memref<128x128xbf16, #tpu.memory_space<vmem>>, vector<128x128xbf16>
    %cst_8 = arith.constant dense<0.000000e+00> : vector<64x128xf32>
    %11 = tpu.matmul %9, %10, %cst_8 {dimension_numbers = #tpu.dot_dimension_numbers<[1], [0], [0], [1], [0, 0, 1, 1], [], []>} : vector<64x128xbf16>, vector<128x128xbf16>, vector<64x128xf32> -> vector<64x128xf32>
    %c0_9 = arith.constant 0 : index
    %c0_10 = arith.constant 0 : index
    %12 = vector.load %arg5[%c0_9, %c0_10] : memref<1x128xf32, #tpu.memory_space<vmem>>, vector<1x128xf32>
    %13 = vector.broadcast %12 : vector<1x128xf32> to vector<64x128xf32>
    %14 = arith.addf %11, %13 : vector<64x128xf32>
    %cst_11 = arith.constant 0.000000e+00 : f32
    %15 = vector.broadcast %cst_11 : f32 to vector<64x128xf32>
    %16 = arith.maximumf %14, %15 : vector<64x128xf32>
    %17 = arith.truncf %16 : vector<64x128xf32> to vector<64x128xbf16>
    %c0_12 = arith.constant 0 : index
    %c0_13 = arith.constant 0 : index
    %18 = vector.load %arg6[%c0_12, %c0_13] : memref<128x128xbf16, #tpu.memory_space<vmem>>, vector<128x128xbf16>
    %cst_14 = arith.constant dense<0.000000e+00> : vector<64x128xf32>
    %19 = tpu.matmul %17, %18, %cst_14 {dimension_numbers = #tpu.dot_dimension_numbers<[1], [0], [0], [1], [0, 0, 1, 1], [], []>} : vector<64x128xbf16>, vector<128x128xbf16>, vector<64x128xf32> -> vector<64x128xf32>
    %c0_15 = arith.constant 0 : index
    %c0_16 = arith.constant 0 : index
    %20 = vector.load %arg7[%c0_15, %c0_16] : memref<1x128xf32, #tpu.memory_space<vmem>>, vector<1x128xf32>
    %21 = vector.broadcast %20 : vector<1x128xf32> to vector<64x128xf32>
    %22 = arith.addf %19, %21 : vector<64x128xf32>
    %cst_17 = arith.constant 0.000000e+00 : f32
    %23 = vector.broadcast %cst_17 : f32 to vector<64x128xf32>
    %24 = arith.maximumf %22, %23 : vector<64x128xf32>
    %25 = arith.truncf %24 : vector<64x128xf32> to vector<64x128xbf16>
    %c0_18 = arith.constant 0 : index
    %c0_19 = arith.constant 0 : index
    %26 = vector.load %arg8[%c0_18, %c0_19] : memref<128x8xbf16, #tpu.memory_space<vmem>>, vector<128x8xbf16>
    %cst_20 = arith.constant dense<0.000000e+00> : vector<64x8xf32>
    %27 = tpu.matmul %25, %26, %cst_20 {dimension_numbers = #tpu.dot_dimension_numbers<[1], [0], [0], [1], [0, 0, 1, 1], [], []>} : vector<64x128xbf16>, vector<128x8xbf16>, vector<64x8xf32> -> vector<64x8xf32>
    %c0_21 = arith.constant 0 : index
    %c0_22 = arith.constant 0 : index
    %28 = vector.load %arg9[%c0_21, %c0_22] : memref<1x8xf32, #tpu.memory_space<vmem>>, vector<1x8xf32>
    %29 = vector.broadcast %28 : vector<1x8xf32> to vector<64x8xf32>
    %30 = arith.addf %27, %29 : vector<64x8xf32>
    %cst_23 = arith.constant 5.000000e-01 : f32
    %31 = vector.broadcast %cst_23 : f32 to vector<64x8xf32>
    %32 = arith.mulf %31, %30 : vector<64x8xf32>
    %33 = math.tanh %32 : vector<64x8xf32>
    %cst_24 = arith.constant 5.000000e-01 : f32
    %34 = vector.broadcast %cst_24 : f32 to vector<64x8xf32>
    %35 = arith.mulf %34, %33 : vector<64x8xf32>
    %cst_25 = arith.constant 5.000000e-01 : f32
    %36 = vector.broadcast %cst_25 : f32 to vector<64x8xf32>
    %37 = arith.addf %35, %36 : vector<64x8xf32>
    %c0_26 = arith.constant 0 : index
    %c0_27 = arith.constant 0 : index
    %38 = vector.load %arg10[%c0_26, %c0_27] : memref<64x8xf32, #tpu.memory_space<vmem>>, vector<64x8xf32>
    tpu.vector_store %arg10[%c0_26, %c0_27], %37 {strides = array<i32>} : memref<64x8xf32, #tpu.memory_space<vmem>>, vector<64x8xf32>,
    return
  }
  func.func @transform_0(%arg0: i32) -> (i32, i32) {
    %c0_i32 = arith.constant 0 : i32
    %c0_i32_0 = arith.constant 0 : i32
    return %arg0, %c0_i32 : i32, i32
  }
  func.func @transform_1(%arg0: i32) -> (i32, i32) {
    %c0_i32 = arith.constant 0 : i32
    %c0_i32_0 = arith.constant 0 : i32
    %c0_i32_1 = arith.constant 0 : i32
    return %c0_i32, %c0_i32_0 : i32, i32
  }
  func.func @transform_2(%arg0: i32) -> (i32, i32) {
    %c0_i32 = arith.constant 0 : i32
    %c0_i32_0 = arith.constant 0 : i32
    %c0_i32_1 = arith.constant 0 : i32
    return %c0_i32, %c0_i32_0 : i32, i32
  }
  func.func @transform_3(%arg0: i32) -> (i32, i32) {
    %c0_i32 = arith.constant 0 : i32
    %c0_i32_0 = arith.constant 0 : i32
    %c0_i32_1 = arith.constant 0 : i32
    return %c0_i32, %c0_i32_0 : i32, i32
  }
  func.func @transform_4(%arg0: i32) -> (i32, i32) {
    %c0_i32 = arith.constant 0 : i32
    %c0_i32_0 = arith.constant 0 : i32
    %c0_i32_1 = arith.constant 0 : i32
    return %c0_i32, %c0_i32_0 : i32, i32
  }
  func.func @transform_5(%arg0: i32) -> (i32, i32) {
    %c0_i32 = arith.constant 0 : i32
    %c0_i32_0 = arith.constant 0 : i32
    %c0_i32_1 = arith.constant 0 : i32
    return %c0_i32, %c0_i32_0 : i32, i32
  }
  func.func @transform_6(%arg0: i32) -> (i32, i32) {
    %c0_i32 = arith.constant 0 : i32
    %c0_i32_0 = arith.constant 0 : i32
    %c0_i32_1 = arith.constant 0 : i32
    return %c0_i32, %c0_i32_0 : i32, i32
  }
  func.func @transform_7(%arg0: i32) -> (i32, i32) {
    %c0_i32 = arith.constant 0 : i32
    %c0_i32_0 = arith.constant 0 : i32
    %c0_i32_1 = arith.constant 0 : i32
    return %c0_i32, %c0_i32_0 : i32, i32
  }
  func.func @transform_8(%arg0: i32) -> (i32, i32) {
    %c0_i32 = arith.constant 0 : i32
    %c0_i32_0 = arith.constant 0 : i32
    %c0_i32_1 = arith.constant 0 : i32
    return %c0_i32, %c0_i32_0 : i32, i32
  }
  func.func @transform_9(%arg0: i32) -> (i32, i32) {
    %c0_i32 = arith.constant 0 : i32
    %c0_i32_0 = arith.constant 0 : i32
    return %arg0, %c0_i32 : i32, i32
  }
}

</mosaic_0001>

<bundles_post_ra>
// kernel: tpu_custom_call.1
= control target key start
LH: loop header
LB: loop body
LE: loop exit
PB: predicated region body
PF: predicated region fallthrough
CT: control target
= control target key end

     0   :  { %vm65_vm0 = vcmask 261120   ;;  %vm466_vm1 = vcmask 64512   ;;  %s833_s1 = inlined_call_operand.vmem [shape: bf16[32,128], index: 1, kind: input, shape index: {}]   ;;  %s834_s0 = inlined_call_operand.vmem [shape: f32[64,32], index: 0, kind: input, shape index: {}]   ;;  %s835_s2 = inlined_call_operand.vmem [shape: f32[1,128], index: 2, kind: input, shape index: {}]   ;;  %s836_s3 = inlined_call_operand.vmem [shape: bf16[128,128], index: 3, kind: input, shape index: {}]   ;;  %s837_s4 = inlined_call_operand.vmem [shape: f32[1,128], index: 4, kind: input, shape index: {}]   ;;  %s838_s5 = inlined_call_operand.vmem [shape: bf16[128,128], index: 5, kind: input, shape index: {}]   ;;  %s839_s6 = inlined_call_operand.vmem [shape: f32[1,128], index: 6, kind: input, shape index: {}]   ;;  %s840_s7 = inlined_call_operand.vmem [shape: bf16[128,8], index: 7, kind: input, shape index: {}]   ;;  %s841_s8 = inlined_call_operand.vmem [shape: f32[1,8], index: 8, kind: input, shape index: {}]   ;;  %s842_s9 = inlined_call_operand.vmem [shape: f32[64,8], index: 9, kind: output, shape index: {}]  }
   0x1   :  { %v588_v0 = vld [vmem:[%s833_s1 + $0x8] sm:$0xff]  ;;  %v587_v1 = vld [vmem:[%s833_s1] sm:$0xff]  ;;  %v35_v5 = vld [vmem:[%s834_s0 + $0x10] sm:$0xff] }
   0x2   :  { %84 = vmatpush.bf16.msra.mxu0 %v588_v0  ;;  %v33_v2 = vld [vmem:[%s834_s0] sm:$0xff]  ;;  %v34_v3 = vld [vmem:[%s834_s0 + $0x8] sm:$0xff]  ;;  %v36_v6 = vld [vmem:[%s834_s0 + $0x18] sm:$0xff] }
   0x3   :  { %v41_v4 = vpack.c.bf16 %v34_v3, %v33_v2  ;;  %v42_v7 = vpack.c.bf16 %v36_v6, %v35_v5  ;;  %v596_v8 = vld [vmem:[%s836_s3 + $0x38] sm:$0xff]  ;;  %v595_v9 = vld [vmem:[%s836_s3 + $0x30] sm:$0xff]  ;;  %v594_v10 = vld [vmem:[%s836_s3 + $0x28] sm:$0xff] }
   0x4   :  { %187 = vmatpush.bf16.msra.mxu1 %v596_v8  ;;  %v37_v11 = vld [vmem:[%s834_s0 + $0x20] sm:$0xff]  ;;  %v38_v12 = vld [vmem:[%s834_s0 + $0x28] sm:$0xff]  ;;  %v39_v15 = vld [vmem:[%s834_s0 + $0x30] sm:$0xff] }
   0x5   :  { %v593_v13 = vld [vmem:[%s836_s3 + $0x20] sm:$0xff]  ;;  %v43_v14 = vpack.c.bf16 %v38_v12, %v37_v11  ;;  %v40_v16 = vld [vmem:[%s834_s0 + $0x38] sm:$0xff]  ;;  %v591_v19 = vld [vmem:[%s836_s3 + $0x10] sm:$0xff] }
   0x6   :  { %85 = vmatpush.bf16.msra.mxu0 %v587_v1  ;;  %v44_v17 = vpack.c.bf16 %v40_v16, %v39_v15  ;;  %v592_v18 = vld [vmem:[%s836_s3 + $0x18] sm:$0xff]  ;;  %v590_v20 = vld [vmem:[%s836_s3 + $0x8] sm:$0xff]  ;;  %v589_v21 = vld [vmem:[%s836_s3] sm:$0xff] }
   0x7   :  { %v613_v23 = vld [vmem:[%s835_s2] ss:$0 sm:$0xff]  ;;  %v604_v37 = vld [vmem:[%s838_s5 + $0x38] sm:$0xff]  ;;  %v603_v39 = vld [vmem:[%s838_s5 + $0x30] sm:$0xff] }
   0x8   :  { %188 = vmatpush.bf16.msra.mxu1 %v595_v9  ;;  %296 = vmatpush.bf16.msra.mxu2 %v604_v37  ;;  %v602_v40 = vld [vmem:[%s838_s5 + $0x28] sm:$0xff]  ;;  %v601_v44 = vld [vmem:[%s838_s5 + $0x20] sm:$0xff]  ;;  %v600_v55 = vld [vmem:[%s838_s5 + $0x18] sm:$0xff] }
   0x9   :  { %487 = vmatmul.msk.bf16.vlgmr.msra.gmra.mxu0 %vm65_vm0, %v41_v4  ;;  %v599_v56 = vld [vmem:[%s838_s5 + $0x10] sm:$0xff]  ;;  %v598_v57 = vld [vmem:[%s838_s5 + $0x8] sm:$0xff]  ;;  %v597_v58 = vld [vmem:[%s838_s5] sm:$0xff] }
   0xa   :  { %v614_v60 = vld [vmem:[%s837_s4] ss:$0 sm:$0xff]  ;;  %v611_v12 = vld [vmem:[%s840_s7 + $0x30] sm:$0xff] }
   0xc   :  { %189 = vmatpush.bf16.msra.mxu1 %v594_v10  ;;  %297 = vmatpush.bf16.msra.mxu2 %v603_v39  ;;  %v612_v10 = vld [vmem:[%s840_s7 + $0x38] sm:$0xff] }
   0xd   :  { %405 = vmatpush.bf16.msra.mxu3 %v612_v10 }
  0x10   :  { %190 = vmatpush.bf16.msra.mxu1 %v593_v13  ;;  %298 = vmatpush.bf16.msra.mxu2 %v602_v40  ;;  %v610_v13 = vld [vmem:[%s840_s7 + $0x28] sm:$0xff] }
  0x11   :  { %406 = vmatpush.bf16.msra.mxu3 %v611_v12 }
  0x14   :  { %191 = vmatpush.bf16.msra.mxu1 %v592_v18  ;;  %299 = vmatpush.bf16.msra.mxu2 %v601_v44 }
  0x15   :  { %407 = vmatpush.bf16.msra.mxu3 %v610_v13 }
  0x18   :  { %192 = vmatpush.bf16.msra.mxu1 %v591_v19  ;;  %300 = vmatpush.bf16.msra.mxu2 %v600_v55 }
  0x19   :  { %488 = vmatmul.msk.bf16.gmra.mxu0 %vm65_vm0, %v42_v7 }
  0x1c   :  { %193 = vmatpush.bf16.msra.mxu1 %v590_v20  ;;  %301 = vmatpush.bf16.msra.mxu2 %v599_v56 }
  0x20   :  { %194 = vmatpush.bf16.msra.mxu1 %v589_v21  ;;  %302 = vmatpush.bf16.msra.mxu2 %v598_v57 }
  0x24   :  { %303 = vmatpush.bf16.msra.mxu2 %v597_v58 }
  0x29   :  { %489 = vmatmul.msk.bf16.gmra.mxu0 %vm65_vm0, %v43_v14 }
  0x39   :  { %490 = vmatmul.msk.bf16.gmra.mxu0 %vm65_vm0, %v44_v17  ;;  %v609_v17 = vld [vmem:[%s840_s7 + $0x20] sm:$0xff] }
  0x3a   :  { %408 = vmatpush.bf16.msra.mxu3 %v609_v17 }
  0x86   :  { %v87_v22 = vpop.f32.mrf.mxu0 }
  0x87   :  { %v88_v24 = vadd.f32 %v613_v23, %v87_v22 }
  0x89   :  { %v107_v27 = vmax.f32 %v88_v24, 0.0 }
  0x8e   :  { %v89_v25 = vpop.f32.mrf.mxu0 }
  0x8f   :  { %v90_v26 = vadd.f32 %v613_v23, %v89_v25 }
  0x91   :  { %v108_v28 = vmax.f32 %v90_v26, 0.0 }
  0x93   :  { %v115_v29 = vpack.c.bf16 %v108_v28, %v107_v27  ;;  %v608_v28 = vld [vmem:[%s840_s7 + $0x18] sm:$0xff] }
  0x94   :  { %409 = vmatpush.bf16.msra.mxu3 %v608_v28 }
  0x95   :  { %195 = vmatmul.bf16.vlgmr.msra.gmra.mxu1 %v115_v29  ;;  %v607_v29 = vld [vmem:[%s840_s7 + $0x10] sm:$0xff] }
  0x96   :  { %v92_v30 = vpop.f32.mrf.mxu0 }
  0x97   :  { %v93_v31 = vadd.f32 %v613_v23, %v92_v30  ;;  %v606_v30 = vld [vmem:[%s840_s7 + $0x8] sm:$0xff] }
  0x98   :  { %410 = vmatpush.bf16.msra.mxu3 %v607_v29 }
  0x99   :  { %v109_v34 = vmax.f32 %v93_v31, 0.0  ;;  %v605_v31 = vld [vmem:[%s840_s7] sm:$0xff] }
  0x9c   :  { %411 = vmatpush.bf16.msra.mxu3 %v606_v30 }
  0x9e   :  { %v94_v32 = vpop.f32.mrf.mxu0 }
  0x9f   :  { %v95_v33 = vadd.f32 %v613_v23, %v94_v32 }
  0xa0   :  { %412 = vmatpush.bf16.msra.mxu3 %v605_v31 }
  0xa1   :  { %v110_v35 = vmax.f32 %v95_v33, 0.0  ;;  %v615_v33 = vld [vmem:[%s839_s6] ss:$0 sm:$0xff] }
  0xa3   :  { %v116_v36 = vpack.c.bf16 %v110_v35, %v109_v34 }
  0xa5   :  { %200 = vmatmul.bf16.gmra.mxu1 %v116_v36 }
  0xa6   :  { %v97_v38 = vpop.f32.mrf.mxu0 }
  0xa7   :  { %v98_v41 = vadd.f32 %v613_v23, %v97_v38 }
  0xa9   :  { %v111_v45 = vmax.f32 %v98_v41, 0.0 }
  0xae   :  { %v99_v42 = vpop.f32.mrf.mxu0 }
  0xaf   :  { %v100_v43 = vadd.f32 %v613_v23, %v99_v42 }
  0xb1   :  { %v112_v46 = vmax.f32 %v100_v43, 0.0 }
  0xb3   :  { %v117_v47 = vpack.c.bf16 %v112_v46, %v111_v45 }
  0xb5   :  { %205 = vmatmul.bf16.gmra.mxu1 %v117_v47 }
  0xb6   :  { %v102_v48 = vpop.f32.mrf.mxu0 }
  0xb7   :  { %v103_v49 = vadd.f32 %v613_v23, %v102_v48 }
  0xb9   :  { %v113_v52 = vmax.f32 %v103_v49, 0.0 }
  0xbe   :  { %v104_v50 = vpop.f32.mrf.mxu0 }
  0xbf   :  { %v105_v51 = vadd.f32 %v613_v23, %v104_v50 }
  0xc1   :  { %v114_v53 = vmax.f32 %v105_v51, 0.0 }
  0xc3   :  { %v118_v54 = vpack.c.bf16 %v114_v53, %v113_v52 }
  0xc5   :  { %210 = vmatmul.bf16.gmra.mxu1 %v118_v54 }
 0x112   :  { %v196_v59 = vpop.f32.mrf.mxu1 }
 0x113   :  { %v197_v61 = vadd.f32 %v614_v60, %v196_v59 }
 0x115   :  { %v216_v0 = vmax.f32 %v197_v61, 0.0  ;;  %v616_v61 = vld [vmem:[%s841_s8] ss:$0 sm:$0xff] }
 0x11a   :  { %v198_v62 = vpop.f32.mrf.mxu1 }
 0x11b   :  { %v199_v63 = vadd.f32 %v614_v60, %v198_v62 }
 0x11d   :  { %v217_v1 = vmax.f32 %v199_v63, 0.0 }
 0x11f   :  { %v224_v2 = vpack.c.bf16 %v217_v1, %v216_v0 }
 0x121   :  { %304 = vmatmul.bf16.vlgmr.msra.gmra.mxu2 %v224_v2 }
 0x122   :  { %v201_v3 = vpop.f32.mrf.mxu1 }
 0x123   :  { %v202_v4 = vadd.f32 %v614_v60, %v201_v3 }
 0x125   :  { %v218_v7 = vmax.f32 %v202_v4, 0.0 }
 0x12a   :  { %v203_v5 = vpop.f32.mrf.mxu1 }
 0x12b   :  { %v204_v6 = vadd.f32 %v614_v60, %v203_v5 }
 0x12d   :  { %v219_v8 = vmax.f32 %v204_v6, 0.0 }
 0x12f   :  { %v225_v9 = vpack.c.bf16 %v219_v8, %v218_v7 }
 0x131   :  { %309 = vmatmul.bf16.gmra.mxu2 %v225_v9 }
 0x132   :  { %v206_v11 = vpop.f32.mrf.mxu1 }
 0x133   :  { %v207_v14 = vadd.f32 %v614_v60, %v206_v11 }
 0x135   :  { %v220_v18 = vmax.f32 %v207_v14, 0.0 }
 0x13a   :  { %v208_v15 = vpop.f32.mrf.mxu1 }
 0x13b   :  { %v209_v16 = vadd.f32 %v614_v60, %v208_v15 }
 0x13d   :  { %v221_v19 = vmax.f32 %v209_v16, 0.0 }
 0x13f   :  { %v226_v20 = vpack.c.bf16 %v221_v19, %v220_v18 }
 0x141   :  { %314 = vmatmul.bf16.gmra.mxu2 %v226_v20 }
 0x142   :  { %v211_v21 = vpop.f32.mrf.mxu1 }
 0x143   :  { %v212_v22 = vadd.f32 %v614_v60, %v211_v21 }
 0x145   :  { %v222_v25 = vmax.f32 %v212_v22, 0.0 }
 0x14a   :  { %v213_v23 = vpop.f32.mrf.mxu1 }
 0x14b   :  { %v214_v24 = vadd.f32 %v614_v60, %v213_v23 }
 0x14d   :  { %v223_v26 = vmax.f32 %v214_v24, 0.0 }
 0x14f   :  { %v227_v27 = vpack.c.bf16 %v223_v26, %v222_v25 }
 0x151   :  { %319 = vmatmul.bf16.gmra.mxu2 %v227_v27 }
 0x1a4   :  { %v305_v32 = vpop.f32.mrf.mxu2 }
 0x1a5   :  { %v306_v34 = vadd.f32 %v615_v33, %v305_v32 }
 0x1a7   :  { %v325_v37 = vmax.f32 %v306_v34, 0.0 }
 0x1ac   :  { %v307_v35 = vpop.f32.mrf.mxu2 }
 0x1ad   :  { %v308_v36 = vadd.f32 %v615_v33, %v307_v35 }
 0x1af   :  { %v326_v38 = vmax.f32 %v308_v36, 0.0 }
 0x1b1   :  { %v333_v39 = vpack.c.bf16 %v326_v38, %v325_v37 }
 0x1b3   :  { %413 = vmatmul.bf16.vlgmr.msra.gmra.mxu3 %v333_v39 }
 0x1b4   :  { %v310_v40 = vpop.f32.mrf.mxu2 }
 0x1b5   :  { %v311_v41 = vadd.f32 %v615_v33, %v310_v40 }
 0x1b7   :  { %v327_v44 = vmax.f32 %v311_v41, 0.0 }
 0x1bc   :  { %v312_v42 = vpop.f32.mrf.mxu2 }
 0x1bd   :  { %v313_v43 = vadd.f32 %v615_v33, %v312_v42 }
 0x1bf   :  { %v328_v45 = vmax.f32 %v313_v43, 0.0 }
 0x1c1   :  { %v334_v46 = vpack.c.bf16 %v328_v45, %v327_v44 }
 0x1c3   :  { %418 = vmatmul.bf16.gmra.mxu3 %v334_v46 }
 0x1c4   :  { %v315_v47 = vpop.f32.mrf.mxu2 }
 0x1c5   :  { %v316_v48 = vadd.f32 %v615_v33, %v315_v47 }
 0x1c7   :  { %v329_v51 = vmax.f32 %v316_v48, 0.0 }
 0x1cc   :  { %v317_v49 = vpop.f32.mrf.mxu2 }
 0x1cd   :  { %v318_v50 = vadd.f32 %v615_v33, %v317_v49 }
 0x1cf   :  { %v330_v52 = vmax.f32 %v318_v50, 0.0 }
 0x1d1   :  { %v335_v53 = vpack.c.bf16 %v330_v52, %v329_v51 }
 0x1d3   :  { %423 = vmatmul.bf16.gmra.mxu3 %v335_v53 }
 0x1d4   :  { %v320_v54 = vpop.f32.mrf.mxu2 }
 0x1d5   :  { %v321_v55 = vadd.f32 %v615_v33, %v320_v54 }
 0x1d7   :  { %v331_v58 = vmax.f32 %v321_v55, 0.0 }
 0x1dc   :  { %v322_v56 = vpop.f32.mrf.mxu2 }
 0x1dd   :  { %v323_v57 = vadd.f32 %v615_v33, %v322_v56 }
 0x1df   :  { %v332_v59 = vmax.f32 %v323_v57, 0.0 }
 0x1e1   :  { %v336_v60 = vpack.c.bf16 %v332_v59, %v331_v58 }
 0x1e3   :  { %428 = vmatmul.bf16.gmra.mxu3 %v336_v60 }
 0x236   :  { %v414_v62 = vpop.f32.mrf.mxu3 }
 0x237   :  { %v415_v63 = vadd.f32 %v616_v61, %v414_v62 }
 0x239   :  { %v434_v0 = vmul.f32 0.5, %v415_v63 }
 0x23b   :  { %617 = vtanh.f32 %v434_v0 }
 0x23e   :  { %v416_v1 = vpop.f32.mrf.mxu3 }
 0x23f   :  { %v417_v2 = vadd.f32 %v616_v61, %v416_v1 }
 0x241   :  { %v618_v3 = vpop.eup %617  ;;  %v435_v4 = vmul.f32 0.5, %v417_v2 }
 0x242   :  { %v450_v5 = vmul.f32 0.5, %v618_v3 }
 0x243   :  { %619 = vtanh.f32 %v435_v4 }
 0x244   :  { %v458_v6 = vadd.f32 0.5, %v450_v5 }
 0x246   :  { %467 = vst.msk [vmem:[%s842_s9] sm:$0xff] %vm466_vm1, %v458_v6  ;;  %v419_v7 = vpop.f32.mrf.mxu3 }
 0x247   :  { %v420_v8 = vadd.f32 %v616_v61, %v419_v7 }
 0x249   :  { %v620_v9 = vpop.eup %619  ;;  %v436_v10 = vmul.f32 0.5, %v420_v8 }
 0x24a   :  { %v451_v11 = vmul.f32 0.5, %v620_v9 }
 0x24b   :  { %621 = vtanh.f32 %v436_v10 }
 0x24c   :  { %v459_v12 = vadd.f32 0.5, %v451_v11 }
 0x24e   :  { %468 = vst.msk [vmem:[%s842_s9 + $0x8] sm:$0xff] %vm466_vm1, %v459_v12  ;;  %v421_v13 = vpop.f32.mrf.mxu3 }
 0x24f   :  { %v422_v14 = vadd.f32 %v616_v61, %v421_v13 }
 0x251   :  { %v622_v15 = vpop.eup %621  ;;  %v437_v16 = vmul.f32 0.5, %v422_v14 }
 0x252   :  { %v452_v17 = vmul.f32 0.5, %v622_v15 }
 0x253   :  { %623 = vtanh.f32 %v437_v16 }
 0x254   :  { %v460_v18 = vadd.f32 0.5, %v452_v17 }
 0x256   :  { %469 = vst.msk [vmem:[%s842_s9 + $0x10] sm:$0xff] %vm466_vm1, %v460_v18  ;;  %v424_v19 = vpop.f32.mrf.mxu3 }
 0x257   :  { %v425_v20 = vadd.f32 %v616_v61, %v424_v19 }
 0x259   :  { %v624_v21 = vpop.eup %623  ;;  %v438_v22 = vmul.f32 0.5, %v425_v20 }
 0x25a   :  { %v453_v23 = vmul.f32 0.5, %v624_v21 }
 0x25b   :  { %625 = vtanh.f32 %v438_v22 }
 0x25c   :  { %v461_v24 = vadd.f32 0.5, %v453_v23 }
 0x25e   :  { %470 = vst.msk [vmem:[%s842_s9 + $0x18] sm:$0xff] %vm466_vm1, %v461_v24  ;;  %v426_v25 = vpop.f32.mrf.mxu3 }
 0x25f   :  { %v427_v26 = vadd.f32 %v616_v61, %v426_v25 }
 0x261   :  { %v626_v27 = vpop.eup %625  ;;  %v439_v28 = vmul.f32 0.5, %v427_v26 }
 0x262   :  { %v454_v29 = vmul.f32 0.5, %v626_v27 }
 0x263   :  { %627 = vtanh.f32 %v439_v28 }
 0x264   :  { %v462_v30 = vadd.f32 0.5, %v454_v29 }
 0x266   :  { %471 = vst.msk [vmem:[%s842_s9 + $0x20] sm:$0xff] %vm466_vm1, %v462_v30  ;;  %v429_v31 = vpop.f32.mrf.mxu3 }
 0x267   :  { %v430_v32 = vadd.f32 %v616_v61, %v429_v31 }
 0x269   :  { %v628_v33 = vpop.eup %627  ;;  %v440_v34 = vmul.f32 0.5, %v430_v32 }
 0x26a   :  { %v455_v35 = vmul.f32 0.5, %v628_v33 }
 0x26b   :  { %629 = vtanh.f32 %v440_v34 }
 0x26c   :  { %v463_v36 = vadd.f32 0.5, %v455_v35 }
 0x26e   :  { %472 = vst.msk [vmem:[%s842_s9 + $0x28] sm:$0xff] %vm466_vm1, %v463_v36  ;;  %v431_v37 = vpop.f32.mrf.mxu3 }
 0x26f   :  { %v432_v38 = vadd.f32 %v616_v61, %v431_v37 }
 0x271   :  { %v630_v39 = vpop.eup %629  ;;  %v441_v40 = vmul.f32 0.5, %v432_v38 }
 0x272   :  { %v456_v41 = vmul.f32 0.5, %v630_v39 }
 0x273   :  { %631 = vtanh.f32 %v441_v40 }
 0x274   :  { %v464_v42 = vadd.f32 0.5, %v456_v41 }
 0x276   :  { %473 = vst.msk [vmem:[%s842_s9 + $0x30] sm:$0xff] %vm466_vm1, %v464_v42 }
 0x279   :  { %v632_v43 = vpop.eup %631 }
 0x27a   :  { %v457_v44 = vmul.f32 0.5, %v632_v43 }
 0x27c   :  { %v465_v45 = vadd.f32 0.5, %v457_v44 }
 0x27e   :  { %474 = vst.msk [vmem:[%s842_s9 + $0x38] sm:$0xff] %vm466_vm1, %v465_v45 }

</bundles_post_ra>
